<compile_context>
chip_gen: v6e
topology: v6e:2x2x1
jax: 0.10.0
libtpu: 0.0.40
codegen_flags: <defaults>
</compile_context>

<pallas_src>
import jax
import jax.numpy as jnp
from jax.experimental import pallas as pl
from jax.experimental.pallas import tpu as pltpu


_TL_MIN = 512                            # min lane tile: keeps strided DMA rows >= 2 KiB
_TL_MAX = 32768                          # max lane tile
_STEP_BYTES_TARGET = 8 * 1024 * 1024     # x + out bytes moved per grid step
_VMEM_LIMIT_BYTES = 40 * 1024 * 1024     # explicit scoped-VMEM limit (safe on v5e/v6e/v7x)
_MIN_GRID_STEPS = 4                      # keep both v7x TensorCores fed


def _conv_bn_relu_kernel(x_ref, w_ref, shift_ref, o_ref):
    # x_ref:     (Bb, C_in, TL)  native dtype (f32/bf16) batch/length tile
    # w_ref:     (C_out, C_in)   f32 conv weight with BN scale pre-folded
    # shift_ref: (C_out, 1)      f32: bn_beta + (conv_bias - running_mean) * scale
    # o_ref:     (Bb, C_out, TL)
    w = w_ref[...]
    shift = shift_ref[...]
    for b in range(x_ref.shape[0]):            # Bb is small & static -> unrolled
        xb = x_ref[b].astype(jnp.float32)      # in-VMEM promotion: free (VPU slack)
        y = jnp.dot(w, xb,
                    preferred_element_type=jnp.float32,
                    precision=jax.lax.Precision.HIGHEST)
        o_ref[b] = jnp.maximum(y + shift, 0.0).astype(o_ref.dtype)


def _round_up(x, m):
    return ((x + m - 1) // m) * m


def _choose_tl(L, col_bytes):
    """Lane (L) tile: full L when small, else a 128-multiple near the byte target."""
    if L <= _TL_MIN:
        return L
    budget = max(_TL_MIN, _STEP_BYTES_TARGET // max(col_bytes, 1))
    tl = min(_TL_MAX, (budget // 128) * 128, _round_up(L, 128))
    return max(tl, _TL_MIN)


def _choose_bb(B, n_l, tl, col_bytes):
    """Batch tile: fold batches while under the byte target and keeping enough steps."""
    bb = 1
    min_steps = min(_MIN_GRID_STEPS, B * n_l)
    for cand in range(2, B + 1):
        if B % cand:
            continue
        if cand * tl * col_bytes > _STEP_BYTES_TARGET:
            break
        if (B // cand) * n_l < min_steps:
            break
        bb = cand
    return bb


def basic_block_1d(x, conv_w, conv_b, bn_gamma, bn_beta, bn_mean, bn_var,
                   eps=1e-5, tl=None, bb=None):
    """Fused Conv1d(kernel_size=1) + BatchNorm1d(eval) + ReLU.

    x: (B, C_in, L) float32 or bfloat16 -> (B, C_out, L) in x.dtype, NCL layout.
    `tl` / `bb` optionally override the L / batch tile (tl must be a multiple
    of 128 and >= 512, or equal L; bb must divide B).
    """
    B, C_in, L = x.shape
    C_out = conv_w.shape[0]
    out_dtype = x.dtype

    # Fold Conv1d(k=1) weight and BN scale into one (C_out, C_in) matrix (f32, tiny).
    scale = (bn_gamma / jnp.sqrt(bn_var + eps)).astype(jnp.float32)       # (C_out,)
    w = conv_w[:, :, 0].astype(jnp.float32) * scale[:, None]              # (C_out, C_in)
    shift = (bn_beta + (conv_b - bn_mean) * scale).astype(jnp.float32)    # (C_out,)
    shift2d = shift.reshape(C_out, 1)

    # NOTE: no wrapper-side cast of x -- it is read in its native dtype and
    # promoted per-tile inside the kernel (avoids a full extra HBM pass).
    col_bytes = (C_in + C_out) * x.dtype.itemsize

    if tl is None:
        tl = _choose_tl(L, col_bytes)
    else:
        assert tl == L or (tl % 128 == 0 and tl >= _TL_MIN), (
            "tl must equal L or be a multiple of 128 and >= %d" % _TL_MIN)
    n_l = pl.cdiv(L, tl)

    if bb is None:
        bb = _choose_bb(B, n_l, tl, col_bytes)
    else:
        assert B % bb == 0, "bb must divide B"

    grid = (B // bb, n_l)

    out = pl.pallas_call(
        _conv_bn_relu_kernel,
        out_shape=jax.ShapeDtypeStruct((B, C_out, L), out_dtype),
        grid=grid,
        in_specs=[
            pl.BlockSpec((bb, C_in, tl), lambda b, l: (b, 0, l)),
            pl.BlockSpec((C_out, C_in), lambda b, l: (0, 0)),
            pl.BlockSpec((C_out, 1), lambda b, l: (0, 0)),
        ],
        out_specs=pl.BlockSpec((bb, C_out, tl), lambda b, l: (b, 0, l)),
        compiler_params=pltpu.CompilerParams(
            dimension_semantics=("parallel", "parallel"),
            vmem_limit_bytes=_VMEM_LIMIT_BYTES),
    )(x, w, shift2d)

    return out


def _reference(x, conv_w, conv_b, bn_gamma, bn_beta, bn_mean, bn_var, eps=1e-5):
    # Pure-JAX (f32) reference of Conv1d(k=1) + BN(eval) + ReLU.
    x = x.astype(jnp.float32)
    y = jnp.einsum('bil,oi->bol', x, conv_w[:, :, 0]) + conv_b[None, :, None]
    y = (y - bn_mean[None, :, None]) / jnp.sqrt(bn_var[None, :, None] + eps)
    y = y * bn_gamma[None, :, None] + bn_beta[None, :, None]
    return jnp.maximum(y, 0.0)


def _make_params(key, C_in, C_out):
    kw, kb, kg, kbe, km, kv = jax.random.split(key, 6)
    conv_w = jax.random.normal(kw, (C_out, C_in, 1), dtype=jnp.float32) * 0.1
    conv_b = jax.random.normal(kb, (C_out,), dtype=jnp.float32) * 0.1
    bn_gamma = jnp.ones((C_out,), jnp.float32) + 0.1 * jax.random.normal(kg, (C_out,))
    bn_beta = 0.1 * jax.random.normal(kbe, (C_out,), dtype=jnp.float32)
    bn_mean = 0.1 * jax.random.normal(km, (C_out,), dtype=jnp.float32)
    bn_var = jnp.abs(jax.random.normal(kv, (C_out,), dtype=jnp.float32)) + 0.5
    return conv_w, conv_b, bn_gamma, bn_beta, bn_mean, bn_var


if __name__ == "__main__":
    key = jax.random.PRNGKey(0)
    kx1, kx2, kx3, kp1, kp2 = jax.random.split(key, 5)

    # Test 1: tiny shapes, single full-L tile, f32.
    B, C_in, C_out, L1 = 2, 4, 8, 16
    params = _make_params(kp1, C_in, C_out)
    x1 = jax.random.normal(kx1, (B, C_in, L1), dtype=jnp.float32)
    out1 = jax.block_until_ready(basic_block_1d(x1, *params))
    ref1 = _reference(x1, *params)
    assert out1.shape == (B, C_out, L1)
    assert jnp.allclose(out1, ref1, atol=1e-4, rtol=1e-4)

    # Test 2: multi-tile grid (batch folding bb=2, ragged last L tile), f32.
    B2, L2 = 4, 1200
    x2 = jax.random.normal(kx2, (B2, C_in, L2), dtype=jnp.float32)
    out2 = jax.block_until_ready(basic_block_1d(x2, *params, tl=512))
    ref2 = _reference(x2, *params)
    assert out2.shape == (B2, C_out, L2)
    assert jnp.allclose(out2, ref2, atol=1e-4, rtol=1e-4)

    # Test 3: bf16 input/output path (native-dtype read, in-kernel promotion).
    B3, C_in3, C_out3, L3 = 2, 8, 16, 640
    params3 = _make_params(kp2, C_in3, C_out3)
    x3 = jax.random.normal(kx3, (B3, C_in3, L3), dtype=jnp.float32).astype(jnp.bfloat16)
    out3 = jax.block_until_ready(basic_block_1d(x3, *params3))
    ref3 = _reference(x3, *params3)
    assert out3.shape == (B3, C_out3, L3)
    assert out3.dtype == jnp.bfloat16
    assert jnp.allclose(out3.astype(jnp.float32), ref3, atol=2e-2, rtol=5e-2)

    print("KERNEL_OK")
</pallas_src>

<mosaic_0001>
module attributes {stable_mosaic.version = 11 : i64} {
  func.func @_conv_bn_relu_kernel(%arg0: i32, %arg1: i32, %arg2: memref<1x4x16xf32, #tpu.memory_space<vmem>>, %arg3: memref<8x4xf32, #tpu.memory_space<vmem>>, %arg4: memref<8x1xf32, #tpu.memory_space<vmem>>, %arg5: memref<1x8x16xf32, #tpu.memory_space<vmem>>) attributes {dimension_semantics = [#tpu.dimension_semantics<parallel>, #tpu.dimension_semantics<parallel>], iteration_bounds = array<i64: 2, 1>, scalar_prefetch = 0 : i64, scratch_operands = 0 : i64, tpu.core_type = #tpu.core_type<tc>, window_params = [{transform_indices = @transform_0, window_bounds = array<i64: 1, 4, 16>}, {pipeline_mode = #tpu.pipeline_mode<synchronous>, transform_indices = @transform_1, window_bounds = array<i64: 8, 4>}, {pipeline_mode = #tpu.pipeline_mode<synchronous>, transform_indices = @transform_2, window_bounds = array<i64: 8, 1>}, {transform_indices = @transform_3, window_bounds = array<i64: 1, 8, 16>}]} {
    %c0 = arith.constant 0 : index
    %c0_0 = arith.constant 0 : index
    %0 = vector.load %arg3[%c0, %c0_0] : memref<8x4xf32, #tpu.memory_space<vmem>>, vector<8x4xf32>
    %c0_1 = arith.constant 0 : index
    %c0_2 = arith.constant 0 : index
    %1 = vector.load %arg4[%c0_1, %c0_2] : memref<8x1xf32, #tpu.memory_space<vmem>>, vector<8x1xf32>
    %c0_3 = arith.constant 0 : index
    %c0_4 = arith.constant 0 : index
    %c0_5 = arith.constant 0 : index
    %2 = vector.load %arg2[%c0_3, %c0_4, %c0_5] : memref<1x4x16xf32, #tpu.memory_space<vmem>>, vector<1x4x16xf32>
    %3 = vector.shape_cast %2 : vector<1x4x16xf32> to vector<4x16xf32>
    %cst = arith.constant dense<0.000000e+00> : vector<8x16xf32>
    %4 = tpu.matmul %0, %3, %cst {dimension_numbers = #tpu.dot_dimension_numbers<[1], [0], [0], [1], [0, 0, 1, 1], [], []>, precision = #tpu.contract_precision<fp32>} : vector<8x4xf32>, vector<4x16xf32>, vector<8x16xf32> -> vector<8x16xf32>
    %5 = vector.broadcast %1 : vector<8x1xf32> to vector<8x16xf32>
    %6 = arith.addf %4, %5 : vector<8x16xf32>
    %cst_6 = arith.constant 0.000000e+00 : f32
    %7 = vector.broadcast %cst_6 : f32 to vector<8x16xf32>
    %8 = arith.maximumf %6, %7 : vector<8x16xf32>
    %c0_7 = arith.constant 0 : index
    %c0_8 = arith.constant 0 : index
    %c0_9 = arith.constant 0 : index
    %9 = vector.load %arg5[%c0_7, %c0_8, %c0_9] : memref<1x8x16xf32, #tpu.memory_space<vmem>>, vector<1x8x16xf32>
    %10 = vector.shape_cast %9 : vector<1x8x16xf32> to vector<8x16xf32>
    %11 = vector.shape_cast %8 : vector<8x16xf32> to vector<1x8x16xf32>
    tpu.vector_store %arg5[%c0_7, %c0_8, %c0_9], %11 {strides = array<i32>} : memref<1x8x16xf32, #tpu.memory_space<vmem>>, vector<1x8x16xf32>,
    return
  }
  func.func @transform_0(%arg0: i32, %arg1: i32) -> (i32, i32, i32) {
    %c0_i32 = arith.constant 0 : i32
    %c0_i32_0 = arith.constant 0 : i32
    return %arg0, %c0_i32, %arg1 : i32, i32, i32
  }
  func.func @transform_1(%arg0: i32, %arg1: i32) -> (i32, i32) {
    %c0_i32 = arith.constant 0 : i32
    %c0_i32_0 = arith.constant 0 : i32
    %c0_i32_1 = arith.constant 0 : i32
    return %c0_i32, %c0_i32_0 : i32, i32
  }
  func.func @transform_2(%arg0: i32, %arg1: i32) -> (i32, i32) {
    %c0_i32 = arith.constant 0 : i32
    %c0_i32_0 = arith.constant 0 : i32
    %c0_i32_1 = arith.constant 0 : i32
    return %c0_i32, %c0_i32_0 : i32, i32
  }
  func.func @transform_3(%arg0: i32, %arg1: i32) -> (i32, i32, i32) {
    %c0_i32 = arith.constant 0 : i32
    %c0_i32_0 = arith.constant 0 : i32
    return %arg0, %c0_i32, %arg1 : i32, i32, i32
  }
}

</mosaic_0001>

<bundles_post_ra>
// kernel: tpu_custom_call.1
= control target key start
LH: loop header
LB: loop body
LE: loop exit
PB: predicated region body
PF: predicated region fallthrough
CT: control target
= control target key end

     0   :  { %8 = vsyncpa [#allocation3], 0  ;;  %s1067_s0 = inlined_call_operand.vmem [shape: f32[2,4,16], index: 0, kind: input, shape index: {}]   ;;  %s1068_s1 = inlined_call_operand.vmem [shape: f32[8,4], index: 1, kind: input, shape index: {}]   ;;  %s1069_s2 = inlined_call_operand.vmem [shape: f32[8,1], index: 2, kind: input, shape index: {}]   ;;  %s1070_s3 = inlined_call_operand.hbm [shape: f32[2,8,16], index: 3, kind: output, shape index: {}]  }
   0x1   :  { %10 = vsyncpa [#allocation3 + $0x1], 0  ;;  %s956_s12 = smov 0   ;;  %s958_s13 = smov 0  }
   0x2   :  { %s960_s14 = smov 0   ;;  %s962_s15 = smov 0  }
   0x3   :  { %s964_s16 = smov 0   ;;  %s966_s17 = smov 0  }
   0x4 LB: > { %s742_s18 = sadd.s32 4294967295, %s930_s17   ;;  %s743_s19 = sadd.s32 4294967294, %s930_s17   ;;  %s930_s17 = sphi %s966_s17, %s16_s17   ;;  %s926_s16 = sphi %s964_s16, %s1077_s16   ;;  %s922_s15 = sphi %s962_s15, %s1076_s15   ;;  %s918_s14 = sphi %s960_s14, %s1075_s14   ;;  %s914_s13 = sphi %s958_s13, %s1074_s13   ;;  %s910_s12 = sphi %s956_s12, %s1073_s12  }
   0x5   : > { %s28_s20 = sadd.s32 1, %s926_s16  ;;  %s107_s21 = sadd.s32 1, %s918_s14 }
   0x6   : > { %p30_p0 = scmp.ge.s32.totalorder %s28_s20, 2  ;;  %p117_p1 = scmp.ne.s32.totalorder %s918_s14, %s914_s13 }
   0x7   : > { %p118_p2 = scmp.eq.s32.totalorder %s742_s18, 1  ;;  %p123_p3 = scmp.ne.s32.totalorder %s914_s13, %s910_s12 }
   0x8   : > { %s1079_s20 = smov (%p30_p0, %s28_s20), 0  ;;  %p124_p5 = scmp.eq.s32.totalorder %s743_s19, 1 }
   0x9   : > { %p996_p4 = por %p118_p2, %p117_p1  ;;  %s102_s23 = ssub.s32 %s926_s16, %s1079_s20 }
   0xa   : > { %p746_p6 = scmp.ge.s32.totalorder %s930_s17, 1  ;;  %p105_p7 = scmp.eq.s32.totalorder %s102_s23, 0 }
   0xb   : > { %p1003_p8 = por %p124_p5, %p123_p3  ;;  %p158_p9 = scmp.lt.s32.totalorder %s930_s17, 3 }
   0xc   : > { %s1009_s25 = scalar_select %p105_p7, %s918_s14, %s107_s21  }
   0xd   : > { %p159_p10 = pnand %p746_p6, %p158_p9 }
   0xe   : > { %p184_p11 = scmp.lt.s32.totalorder (!%p159_p10), %s922_s15, 1  ;;  %s181_s8 = sand.u32 (!%p159_p10), 1, %s914_s13  }
   0xf   : > { %162 = sbr.rel (%p159_p10) target bundleno = 256 (0x100), region = 32  ;;  %s747_s9 = sshll.u32 (!%p159_p10), %s181_s8, 3 }
  0x10   : > { %s750_s10 = sshll.u32 (!%p159_p10), %s922_s15, 7  ;;  %s183_s11 = scalar_lea.vmem (!%p159_p10), [#allocation2], %s747_s9 }
  0x11   : > { %s671_s18 = sshll.u32 (!%p159_p10), %s183_s11, 4  ;;  %s669_s23 = scalar_lea.hbm (!%p159_p10), %s1070_s3, %s750_s10  ;;  %s672_s18 = int_to_ptr.vmem [resolvable:$true] %s671_s18 }
  0x12   : > { %s657_s26 = scalar_lea.sflag (!%p159_p10), [#allocation3], %s181_s8  ;;  %s854_s27 = scalar_lea.vmem (!%p159_p10), %s672_s18, 128 }
  0x13   : > { %p855_p12 = scmp.ne.s32.totalorder (!%p159_p10), %s672_s18, %s854_s27  ;;  %s935_s28 = smov (!%p159_p10), [#allocation2]  }
  0x14   : > { %v191_v0 = vld [vmem:[%s1068_s1] sm:$0xff]  ;;  %vm199_vm0 = vcmask 31744   ;;  %v932_v1 = vmov 0.0   ;;  %vm933_vm1 = vmmov 0   ;;  %s185_s30 = scalar_select %p184_p11, %s922_s15, 1  ;;  %v934_v5 = vmov 0  }
  0x15   : > { %765 = vmatprep.subr.mxu0 %v932_v1  ;;  %767 = vmatprep.mubr.msk.f32.mxu0 %vm933_vm1, %v932_v1  ;;  %v201_v2 = vsel %vm199_vm0, %v191_v0, 0  ;;  %v192_v3 = vld [vmem:[%s1069_s2] sm:$0xff]  ;;  %vm203_vm2 = vcmask 1043456   ;;  %vm654_vm3 = vcmask 130048   ;;  %p856_p13 = pnand %p855_p12, %p996_p4  ;;  %s858_s15 = sshll.u32 %s935_s28, 4  ;;  %s859_s15 = int_to_ptr.vmem [resolvable:$false] %s858_s15 }
  0x16   : > { %v273_v4 = vand.u32 4294901760, %v201_v2  ;;  %770 = vmatprep.subr.mxu1 %v932_v1  ;;  %772 = vmatprep.mubr.msk.f32.mxu1 %vm933_vm1, %v932_v1  ;;  %s748_s4 = sshll.u32 %s185_s30, 2  ;;  %s860_s29 = scalar_lea.vmem %s859_s15, 256 }
  0x17   : > { %853 = vset.pattern.permute.xlu0 %v934_v5  ;;  %s190_s7 = scalar_lea.vmem %s1067_s0, %s748_s4  ;;  %p857_p0 = pneg %p856_p13 }
  0x18   : > { %v274_v6 = vsub.f32 %v201_v2, %v273_v4  ;;  %196 = vperm.xlu0 %853, %v192_v3   ;;  %v193_v7 = vld [vmem:[%s190_s7] sm:$0xf]  ;;  %p861_p1 = scmp.lt.s32.totalorder %s672_s18, %s859_s15  ;;  %p862_p2 = scmp.lt.s32.totalorder %s860_s29, %s854_s27 }
  0x19   : > { %v205_v9 = vsel %vm203_vm2, %v193_v7, 0 }
  0x1a   : > { %v275_v8 = vand.u32 4294901760, %v274_v6  ;;  %v238_v10 = vand.u32 4294901760, %v205_v9  ;;  %p863_p3 = por %p862_p2, %p861_p1 }
  0x1c   : > { %v276_v11 = vsub.f32 %v274_v6, %v275_v8  ;;  %766 = vmatpush3.msra.mxu0 %v238_v10  ;;  %v315_v13 = vsub.f32 %v205_v9, %v238_v10  ;;  %p864_p5 = pnand %p863_p3, %p857_p0 }
  0x1d   : > { %775 = vmatprep.subr.mxu0 %v932_v1 }
  0x1e   : > { %v277_v12 = vand.u32 4294901760, %v276_v11  ;;  %v316_v14 = vand.u32 4294901760, %v315_v13 }
  0x20   : > { %768 = vmatmul.mubr.f32.vlgmr.msra.gmra.mxu0 %v277_v12  ;;  %v317_v15 = vsub.f32 %v315_v13, %v316_v14 }
  0x21   : > { %776 = vmatpush3.msra.mxu0 %v315_v13  ;;  %777 = vmatprep.mubr.msk.f32.mxu0 %vm933_vm1, %v932_v1 }
  0x22   : > { %785 = vmatprep.subr.mxu0 %v932_v1  ;;  %v318_v16 = vand.u32 4294901760, %v317_v15 }
  0x24   : > { %778 = vmatmul.mubr.f32.vlgmr.msra.gmra.mxu0 %v274_v6  ;;  %771 = vmatpush3.msra.mxu1 %v318_v16 }
  0x25   : > { %786 = vmatpush3.msra.mxu0 %v316_v14  ;;  %787 = vmatprep.mubr.msk.f32.mxu0 %vm933_vm1, %v932_v1 }
  0x26   : > { %773 = vmatmul.mubr.f32.vlgmr.msra.gmra.mxu1 %v273_v4  ;;  %780 = vmatprep.subr.mxu1 %v932_v1 }
  0x27   : > { %781 = vmatpush3.msra.mxu1 %v238_v10  ;;  %782 = vmatprep.mubr.msk.f32.mxu1 %vm933_vm1, %v932_v1 }
  0x28   : > { %790 = vmatprep.subr.mxu1 %v932_v1  ;;  %788 = vmatmul.mubr.f32.vlgmr.msra.gmra.mxu0 %v273_v4 }
  0x2a   : > { %783 = vmatmul.mubr.f32.vlgmr.msra.gmra.mxu1 %v275_v8 }
  0x2b   : > { %791 = vmatpush3.msra.mxu1 %v238_v10  ;;  %792 = vmatprep.mubr.msk.f32.mxu1 %vm933_vm1, %v932_v1 }
  0x2e   : > { %793 = vmatmul.mubr.f32.vlgmr.msra.gmra.mxu1 %v273_v4 }
  0x93   : > { %v197_v18 = vpop.permute.xlu0 %196 }
  0xe0   : > { %v279_v17 = vpop.f32.mrf.mxu0 }
  0xe1   : > { %v280_v20 = vadd.f32 %v279_v17, %v197_v18 }
  0xe2   : > { %v769_v19 = vpop.f32.mrf.mxu0 }
  0xe4   : > { %v429_v21 = vpop.f32.mrf.mxu0 }
  0xe6   : > { %v779_v22 = vpop.f32.mrf.mxu0  ;;  %v355_v23 = vpop.f32.mrf.mxu1 }
  0xe7   : > { %v356_v24 = vadd.f32 %v355_v23, %v280_v20 }
  0xe8   : > { %v774_v25 = vpop.f32.mrf.mxu1  ;;  %v577_v26 = vpop.f32.mrf.mxu0 }
  0xe9   : > { %v430_v27 = vadd.f32 %v429_v21, %v356_v24 }
  0xea   : > { %v503_v28 = vpop.f32.mrf.mxu1  ;;  %v789_v29 = vpop.f32.mrf.mxu0 }
  0xeb   : > { %v504_v30 = vadd.f32 %v503_v28, %v430_v27 }
  0xec   : > { %v784_v31 = vpop.f32.mrf.mxu1 }
  0xed   : > { %v578_v32 = vadd.f32 %v577_v26, %v504_v30 }
  0xee   : > { %v649_v33 = vpop.f32.mrf.mxu1 }
  0xef   : > { %v650_v34 = vadd.f32 %v649_v33, %v578_v32 }
  0xf0   : > { %v794_v35 = vpop.f32.mrf.mxu1 }
  0xf1   : > { %v653_v36 = vmax.f32 %v650_v34, 0.0 }
  0xf3   : > { %655 = vst.msk [vmem:[%s183_s11] sm:$0xff] %vm654_vm3, %v653_v36 }
  0xf4   : > { %867 = shalt.err (!%p864_p5)
}
  0xf5   : > { %s868_s30 = scalar_lea.hbm %s669_s23, 128  ;;  %s872_s6 = scalar_lea.hbm %s1070_s3, 256 }
  0xf6   : > { %p869_p6 = scmp.ne.s32.totalorder %s669_s23, %s868_s30  ;;  %p873_p10 = scmp.lt.s32.totalorder %s669_s23, %s1070_s3 }
  0xf7   : > { %p874_p11 = scmp.lt.s32.totalorder %s872_s6, %s868_s30 }
  0xf8   : > { %p870_p7 = pnand %p869_p6, %p996_p4 }
  0xf9   : > { %p875_p12 = por %p874_p11, %p873_p10 }
  0xfa   : > { %p871_p9 = pneg %p870_p7 }
  0xfc   : > { %p876_p13 = pnand %p875_p12, %p871_p9 }
  0xfe   : > { %879 = shalt.err (!%p876_p13)
}
  0xff   : > { %795 = dma.vmem_to_hbm [thread:$0]  (%p996_p4), %s672_s18, 128, %s669_s23, %s657_s26  }
 0x100 PF: > { %p801_p0 = scmp.ge.s32.totalorder %s930_s17, 2  ;;  %s683_s9 = sand.u32 1, %s910_s12  }
 0x101   : > { %s684_s10 = scalar_lea.sflag [#allocation3], %s683_s9 }
 0x102   : > { %p798_p1 = pnand %p801_p0, %p1003_p8 }
 0x104   : > { %p799_p2 = pneg %p798_p1 }
 0x106   : > { %905 = dma.done.wait (%p799_p2), %s684_s10, 128  }
 0x107   : > { %907 = vsyncadd (%p799_p2), %s684_s10, 4294967168  ;;  %s16_s17 = sadd.s32 1, %s930_s17   ;;  %s1073_s12 = smov %s914_s13 }
 0x108   : > { %p13_p3 = scmp.ge.s32.totalorder %s16_s17, 4   ;;  %s1074_s13 = smov %s918_s14 }
 0x109   : > { %s1075_s14 = smov %s1009_s25  ;;  %s1076_s15 = smov %s926_s16 }
 0x10a   : > { %s1077_s16 = smov %s1079_s20  ;;  %15 = sbr.rel (!%p13_p3) target bundleno = 4 (0x4), region = 67 }
 0x10f   :  { %689 = vsyncpa [#allocation3], 1 }
 0x110   :  { %691 = vsyncpa [#allocation3 + $0x1], 1 }

</bundles_post_ra>
